<compile_context>
chip_gen: v5e
topology: v5e:2x2
jax: 0.10.0
libtpu: 0.0.40
codegen_flags: <defaults>
</compile_context>

<pallas_src>
import functools

import jax
import jax.numpy as jnp
from jax.experimental import pallas as pl
from jax.experimental.pallas import tpu as pltpu


def _mha_map_kernel(qa_ref, qb_ref, k_ref, out_ref, *, num_heads, hw):
    # Per-block tile (Bt = 1 on multi-TC chips, Bt = B on single-TC chips):
    #   qa_ref : (Bt, N, Q, D)     per-head queries (norm, Wq, bq, Wk folded in)
    #   qb_ref : (Bt, N, Q, 1)     per-(head, query) key-bias term
    #   k_ref  : (Bt, D, HW)       raw keys, channel-major (no wrapper copy)
    #   out_ref: (Bt, Q, N*HW)     attention map, lane-dense softmax layout
    bt = qa_ref.shape[0]
    for b in range(bt):
        k = k_ref[b]                                             # (D, HW)

        # Per-head logits straight into the output block at lane-aligned
        # n*HW column offsets (multiples of 256 lanes here).
        for n in range(num_heads):
            l = jnp.dot(qa_ref[b, n], k,
                        preferred_element_type=jnp.float32)      # (Q, HW)
            out_ref[b, :, n * hw:(n + 1) * hw] = l + qb_ref[b, n]

        # Softmax over heads AND spatial positions jointly (flatten(2), dim=-1).
        logits = out_ref[b]                                      # (Q, N*HW)
        m = jnp.max(logits, axis=-1, keepdims=True)
        e = jnp.exp(logits - m)
        s = jnp.sum(e, axis=-1, keepdims=True)
        r = pl.reciprocal(s, approx=True)                        # EUP vrcp
        r = r * (2.0 - s * r)                                    # one Newton step
        out_ref[b] = e * r


def _multi_tensorcore():
    """Best-effort check for chips with 2 TensorCores behind one device
    (v4 / v5p / v7x megacore); a per-batch 'parallel' grid only helps there."""
    try:
        kind = jax.devices()[0].device_kind.lower()
    except Exception:
        return True
    return any(t in kind for t in ("v7", "7x", "v4", "v5p"))


def mha_attention_map(q, k_nchw, wq, bq, wk, bk, num_heads):
    """q: (B, Q, D) f32; k_nchw: (B, D, H, W) f32. Returns (B, Q, N, H, W)."""
    B, Qn, D = q.shape
    _, Dk, H, W = k_nchw.shape
    assert Dk == D
    HD = wq.shape[0]
    assert HD % num_heads == 0, "hidden_dim must be divisible by num_heads"
    c = HD // num_heads
    HW = H * W
    norm = float(HD / num_heads) ** (-0.5)

    # ---- one-time wrapper-side precompute (tiny XLA work) -----------------
    # Fused per-head matrix A_n = norm * [Wq_n | bq_n]^T @ [Wk_n | bk_n].
    wq_aug = jnp.concatenate([wq, bq[:, None]], axis=1)            # (HD, D+1)
    wk_aug = jnp.concatenate([wk, bk[:, None]], axis=1)            # (HD, D+1)
    wq_h = wq_aug.reshape(num_heads, c, D + 1)
    wk_h = wk_aug.reshape(num_heads, c, D + 1)
    a = norm * jnp.einsum('nce,ncf->nef', wq_h, wk_h,
                          precision=jax.lax.Precision.HIGHEST)     # (N, D+1, D+1)

    # Pre-apply A to the (augmented) queries so the kernel LHS is only Q rows.
    q_aug = jnp.concatenate([q, jnp.ones((B, Qn, 1), q.dtype)], axis=-1)
    qa = jnp.einsum('bqe,nef->bnqf', q_aug, a,
                    precision=jax.lax.Precision.HIGHEST)           # (B, N, Q, D+1)
    qa_w = qa[..., :D]                                             # (B, N, Q, D)
    qa_b = qa[..., D:]                                             # (B, N, Q, 1)

    # Keys used exactly as given: channel-major, no augmentation / padding.
    k_flat = k_nchw.reshape(B, D, HW)                              # (B, D, HW)
    # ------------------------------------------------------------------------

    kernel = functools.partial(_mha_map_kernel, num_heads=num_heads, hw=HW)

    if _multi_tensorcore() and B > 1:
        # Megacore chips: one batch per grid step, sharded across TensorCores.
        grid, bt, semantics = (B,), 1, ("parallel",)
    else:
        # Single-TC chips (v5e / v6e): collapse the grid — grid steps are pure
        # pipeline overhead at these shapes (total DMA ~150 KiB).
        grid, bt, semantics = (1,), B, ("arbitrary",)

    out_flat = pl.pallas_call(
        kernel,
        out_shape=jax.ShapeDtypeStruct((B, Qn, num_heads * HW), jnp.float32),
        grid_spec=pltpu.PrefetchScalarGridSpec(
            num_scalar_prefetch=0,
            grid=grid,
            in_specs=[
                pl.BlockSpec((bt, num_heads, Qn, D), lambda b: (b, 0, 0, 0)),
                pl.BlockSpec((bt, num_heads, Qn, 1), lambda b: (b, 0, 0, 0)),
                pl.BlockSpec((bt, D, HW), lambda b: (b, 0, 0)),
            ],
            out_specs=pl.BlockSpec((bt, Qn, num_heads * HW),
                                   lambda b: (b, 0, 0)),
        ),
        compiler_params=pltpu.CompilerParams(
            dimension_semantics=semantics),
    )(qa_w, qa_b, k_flat)

    return out_flat.reshape(B, Qn, num_heads, H, W)


def _reference(q, k_nchw, wq, bq, wk, bk, num_heads):
    """Pure-JAX reference mirroring the PyTorch forward."""
    B, Qn, D = q.shape
    _, _, H, W = k_nchw.shape
    HD = wq.shape[0]
    c = HD // num_heads
    norm = float(HD / num_heads) ** (-0.5)
    qp = q @ wq.T + bq                                             # (B, Q, HD)
    kp = jnp.einsum('bdhw,ed->behw', k_nchw, wk) + bk[None, :, None, None]
    qh = qp.reshape(B, Qn, num_heads, c)
    kh = kp.reshape(B, num_heads, c, H, W)
    wts = jnp.einsum('bqnc,bnchw->bqnhw', qh * norm, kh)
    flat = wts.reshape(B, Qn, -1)
    soft = jax.nn.softmax(flat, axis=-1)
    return soft.reshape(B, Qn, num_heads, H, W)


def _xavier_uniform(key, shape):
    fan_out, fan_in = shape
    limit = (6.0 / (fan_in + fan_out)) ** 0.5
    return jax.random.uniform(key, shape, jnp.float32, -limit, limit)


if __name__ == "__main__":
    # Module config: query_dim=32, hidden_dim=32, num_heads=4
    B, Qn, D, HD, N = 2, 8, 32, 32, 4
    H = W = 16

    key = jax.random.PRNGKey(0)
    k_q, k_k, k_wq, k_wk = jax.random.split(key, 4)

    q = jax.random.normal(k_q, (B, Qn, D), jnp.float32)
    k_nchw = jax.random.normal(k_k, (B, D, H, W), jnp.float32)

    # Deterministic parameter init matching nn.init in __init__:
    # xavier_uniform_ weights, zero biases.
    wq = _xavier_uniform(k_wq, (HD, D))
    wk = _xavier_uniform(k_wk, (HD, D))
    bq = jnp.zeros((HD,), jnp.float32)
    bk = jnp.zeros((HD,), jnp.float32)

    out = mha_attention_map(q, k_nchw, wq, bq, wk, bk, N)
    out = jax.block_until_ready(out)

    ref = _reference(q, k_nchw, wq, bq, wk, bk, N)
    assert out.shape == (B, Qn, N, H, W)
    assert jnp.allclose(out, ref, rtol=1e-5, atol=1e-5)

    print("KERNEL_OK")
</pallas_src>

<mosaic_0001>
module attributes {stable_mosaic.version = 11 : i64} {
  func.func @_mha_map_kernel(%arg0: i32, %arg1: memref<2x4x8x32xf32, #tpu.memory_space<vmem>>, %arg2: memref<2x4x8x1xf32, #tpu.memory_space<vmem>>, %arg3: memref<2x32x256xf32, #tpu.memory_space<vmem>>, %arg4: memref<2x8x1024xf32, #tpu.memory_space<vmem>>) attributes {dimension_semantics = [#tpu.dimension_semantics<arbitrary>], iteration_bounds = array<i64: 1>, scalar_prefetch = 0 : i64, scratch_operands = 0 : i64, tpu.core_type = #tpu.core_type<tc>, window_params = [{transform_indices = @transform_0, window_bounds = array<i64: 2, 4, 8, 32>}, {transform_indices = @transform_1, window_bounds = array<i64: 2, 4, 8, 1>}, {transform_indices = @transform_2, window_bounds = array<i64: 2, 32, 256>}, {transform_indices = @transform_3, window_bounds = array<i64: 2, 8, 1024>}]} {
    %c0 = arith.constant 0 : index
    %c0_0 = arith.constant 0 : index
    %c0_1 = arith.constant 0 : index
    %0 = vector.load %arg3[%c0, %c0_0, %c0_1] : memref<2x32x256xf32, #tpu.memory_space<vmem>>, vector<1x32x256xf32>
    %1 = vector.shape_cast %0 : vector<1x32x256xf32> to vector<32x256xf32>
    %c0_2 = arith.constant 0 : index
    %c0_3 = arith.constant 0 : index
    %c0_4 = arith.constant 0 : index
    %c0_5 = arith.constant 0 : index
    %2 = vector.load %arg1[%c0_2, %c0_3, %c0_4, %c0_5] : memref<2x4x8x32xf32, #tpu.memory_space<vmem>>, vector<1x1x8x32xf32>
    %3 = vector.shape_cast %2 : vector<1x1x8x32xf32> to vector<8x32xf32>
    %cst = arith.constant dense<0.000000e+00> : vector<8x256xf32>
    %4 = tpu.matmul %3, %1, %cst {dimension_numbers = #tpu.dot_dimension_numbers<[1], [0], [0], [1], [0, 0, 1, 1], [], []>} : vector<8x32xf32>, vector<32x256xf32>, vector<8x256xf32> -> vector<8x256xf32>
    %c0_6 = arith.constant 0 : index
    %c0_7 = arith.constant 0 : index
    %c0_8 = arith.constant 0 : index
    %c0_9 = arith.constant 0 : index
    %5 = vector.load %arg2[%c0_6, %c0_7, %c0_8, %c0_9] : memref<2x4x8x1xf32, #tpu.memory_space<vmem>>, vector<1x1x8x1xf32>
    %6 = vector.shape_cast %5 : vector<1x1x8x1xf32> to vector<8x1xf32>
    %7 = vector.broadcast %6 : vector<8x1xf32> to vector<8x256xf32>
    %8 = arith.addf %4, %7 : vector<8x256xf32>
    %c0_10 = arith.constant 0 : index
    %c0_11 = arith.constant 0 : index
    %c0_12 = arith.constant 0 : index
    %9 = vector.load %arg4[%c0_10, %c0_11, %c0_12] : memref<2x8x1024xf32, #tpu.memory_space<vmem>>, vector<1x8x256xf32>
    %10 = vector.shape_cast %9 : vector<1x8x256xf32> to vector<8x256xf32>
    %11 = vector.shape_cast %8 : vector<8x256xf32> to vector<1x8x256xf32>
    tpu.vector_store %arg4[%c0_10, %c0_11, %c0_12], %11 {strides = array<i32>} : memref<2x8x1024xf32, #tpu.memory_space<vmem>>, vector<1x8x256xf32>,
    %c0_13 = arith.constant 0 : index
    %c1 = arith.constant 1 : index
    %c0_14 = arith.constant 0 : index
    %c0_15 = arith.constant 0 : index
    %12 = vector.load %arg1[%c0_13, %c1, %c0_14, %c0_15] : memref<2x4x8x32xf32, #tpu.memory_space<vmem>>, vector<1x1x8x32xf32>
    %13 = vector.shape_cast %12 : vector<1x1x8x32xf32> to vector<8x32xf32>
    %cst_16 = arith.constant dense<0.000000e+00> : vector<8x256xf32>
    %14 = tpu.matmul %13, %1, %cst_16 {dimension_numbers = #tpu.dot_dimension_numbers<[1], [0], [0], [1], [0, 0, 1, 1], [], []>} : vector<8x32xf32>, vector<32x256xf32>, vector<8x256xf32> -> vector<8x256xf32>
    %c0_17 = arith.constant 0 : index
    %c1_18 = arith.constant 1 : index
    %c0_19 = arith.constant 0 : index
    %c0_20 = arith.constant 0 : index
    %15 = vector.load %arg2[%c0_17, %c1_18, %c0_19, %c0_20] : memref<2x4x8x1xf32, #tpu.memory_space<vmem>>, vector<1x1x8x1xf32>
    %16 = vector.shape_cast %15 : vector<1x1x8x1xf32> to vector<8x1xf32>
    %17 = vector.broadcast %16 : vector<8x1xf32> to vector<8x256xf32>
    %18 = arith.addf %14, %17 : vector<8x256xf32>
    %c0_21 = arith.constant 0 : index
    %c0_22 = arith.constant 0 : index
    %c256 = arith.constant 256 : index
    %19 = vector.load %arg4[%c0_21, %c0_22, %c256] : memref<2x8x1024xf32, #tpu.memory_space<vmem>>, vector<1x8x256xf32>
    %20 = vector.shape_cast %19 : vector<1x8x256xf32> to vector<8x256xf32>
    %21 = vector.shape_cast %18 : vector<8x256xf32> to vector<1x8x256xf32>
    tpu.vector_store %arg4[%c0_21, %c0_22, %c256], %21 {strides = array<i32>} : memref<2x8x1024xf32, #tpu.memory_space<vmem>>, vector<1x8x256xf32>,
    %c0_23 = arith.constant 0 : index
    %c2 = arith.constant 2 : index
    %c0_24 = arith.constant 0 : index
    %c0_25 = arith.constant 0 : index
    %22 = vector.load %arg1[%c0_23, %c2, %c0_24, %c0_25] : memref<2x4x8x32xf32, #tpu.memory_space<vmem>>, vector<1x1x8x32xf32>
    %23 = vector.shape_cast %22 : vector<1x1x8x32xf32> to vector<8x32xf32>
    %cst_26 = arith.constant dense<0.000000e+00> : vector<8x256xf32>
    %24 = tpu.matmul %23, %1, %cst_26 {dimension_numbers = #tpu.dot_dimension_numbers<[1], [0], [0], [1], [0, 0, 1, 1], [], []>} : vector<8x32xf32>, vector<32x256xf32>, vector<8x256xf32> -> vector<8x256xf32>
    %c0_27 = arith.constant 0 : index
    %c2_28 = arith.constant 2 : index
    %c0_29 = arith.constant 0 : index
    %c0_30 = arith.constant 0 : index
    %25 = vector.load %arg2[%c0_27, %c2_28, %c0_29, %c0_30] : memref<2x4x8x1xf32, #tpu.memory_space<vmem>>, vector<1x1x8x1xf32>
    %26 = vector.shape_cast %25 : vector<1x1x8x1xf32> to vector<8x1xf32>
    %27 = vector.broadcast %26 : vector<8x1xf32> to vector<8x256xf32>
    %28 = arith.addf %24, %27 : vector<8x256xf32>
    %c0_31 = arith.constant 0 : index
    %c0_32 = arith.constant 0 : index
    %c512 = arith.constant 512 : index
    %29 = vector.load %arg4[%c0_31, %c0_32, %c512] : memref<2x8x1024xf32, #tpu.memory_space<vmem>>, vector<1x8x256xf32>
    %30 = vector.shape_cast %29 : vector<1x8x256xf32> to vector<8x256xf32>
    %31 = vector.shape_cast %28 : vector<8x256xf32> to vector<1x8x256xf32>
    tpu.vector_store %arg4[%c0_31, %c0_32, %c512], %31 {strides = array<i32>} : memref<2x8x1024xf32, #tpu.memory_space<vmem>>, vector<1x8x256xf32>,
    %c0_33 = arith.constant 0 : index
    %c3 = arith.constant 3 : index
    %c0_34 = arith.constant 0 : index
    %c0_35 = arith.constant 0 : index
    %32 = vector.load %arg1[%c0_33, %c3, %c0_34, %c0_35] : memref<2x4x8x32xf32, #tpu.memory_space<vmem>>, vector<1x1x8x32xf32>
    %33 = vector.shape_cast %32 : vector<1x1x8x32xf32> to vector<8x32xf32>
    %cst_36 = arith.constant dense<0.000000e+00> : vector<8x256xf32>
    %34 = tpu.matmul %33, %1, %cst_36 {dimension_numbers = #tpu.dot_dimension_numbers<[1], [0], [0], [1], [0, 0, 1, 1], [], []>} : vector<8x32xf32>, vector<32x256xf32>, vector<8x256xf32> -> vector<8x256xf32>
    %c0_37 = arith.constant 0 : index
    %c3_38 = arith.constant 3 : index
    %c0_39 = arith.constant 0 : index
    %c0_40 = arith.constant 0 : index
    %35 = vector.load %arg2[%c0_37, %c3_38, %c0_39, %c0_40] : memref<2x4x8x1xf32, #tpu.memory_space<vmem>>, vector<1x1x8x1xf32>
    %36 = vector.shape_cast %35 : vector<1x1x8x1xf32> to vector<8x1xf32>
    %37 = vector.broadcast %36 : vector<8x1xf32> to vector<8x256xf32>
    %38 = arith.addf %34, %37 : vector<8x256xf32>
    %c0_41 = arith.constant 0 : index
    %c0_42 = arith.constant 0 : index
    %c768 = arith.constant 768 : index
    %39 = vector.load %arg4[%c0_41, %c0_42, %c768] : memref<2x8x1024xf32, #tpu.memory_space<vmem>>, vector<1x8x256xf32>
    %40 = vector.shape_cast %39 : vector<1x8x256xf32> to vector<8x256xf32>
    %41 = vector.shape_cast %38 : vector<8x256xf32> to vector<1x8x256xf32>
    tpu.vector_store %arg4[%c0_41, %c0_42, %c768], %41 {strides = array<i32>} : memref<2x8x1024xf32, #tpu.memory_space<vmem>>, vector<1x8x256xf32>,
    %c0_43 = arith.constant 0 : index
    %c0_44 = arith.constant 0 : index
    %c0_45 = arith.constant 0 : index
    %42 = vector.load %arg4[%c0_43, %c0_44, %c0_45] : memref<2x8x1024xf32, #tpu.memory_space<vmem>>, vector<1x8x1024xf32>
    %43 = vector.shape_cast %42 : vector<1x8x1024xf32> to vector<8x1024xf32>
    %cst_46 = arith.constant dense<0xFF800000> : vector<8xf32>
    %44 = vector.multi_reduction <maximumf>, %43, %cst_46 [1] : vector<8x1024xf32> to vector<8xf32>
    %45 = vector.shape_cast %44 : vector<8xf32> to vector<8x1xf32>
    %46 = vector.broadcast %45 : vector<8x1xf32> to vector<8x1024xf32>
    %47 = arith.subf %43, %46 : vector<8x1024xf32>
    %48 = math.exp %47 : vector<8x1024xf32>
    %cst_47 = arith.constant dense<0.000000e+00> : vector<8xf32>
    %49 = vector.multi_reduction <add>, %48, %cst_47 [1] : vector<8x1024xf32> to vector<8xf32>
    %50 = vector.shape_cast %49 : vector<8xf32> to vector<8x1xf32>
    %51 = tpu.reciprocal %50 {approx = true} : vector<8x1xf32> -> vector<8x1xf32>
    %52 = arith.mulf %50, %51 : vector<8x1xf32>
    %cst_48 = arith.constant 2.000000e+00 : f32
    %53 = vector.broadcast %cst_48 : f32 to vector<8x1xf32>
    %54 = arith.subf %53, %52 : vector<8x1xf32>
    %55 = arith.mulf %51, %54 : vector<8x1xf32>
    %56 = vector.broadcast %55 : vector<8x1xf32> to vector<8x1024xf32>
    %57 = arith.mulf %48, %56 : vector<8x1024xf32>
    %c0_49 = arith.constant 0 : index
    %c0_50 = arith.constant 0 : index
    %c0_51 = arith.constant 0 : index
    %58 = vector.load %arg4[%c0_49, %c0_50, %c0_51] : memref<2x8x1024xf32, #tpu.memory_space<vmem>>, vector<1x8x1024xf32>
    %59 = vector.shape_cast %58 : vector<1x8x1024xf32> to vector<8x1024xf32>
    %60 = vector.shape_cast %57 : vector<8x1024xf32> to vector<1x8x1024xf32>
    tpu.vector_store %arg4[%c0_49, %c0_50, %c0_51], %60 {strides = array<i32>} : memref<2x8x1024xf32, #tpu.memory_space<vmem>>, vector<1x8x1024xf32>,
    %c1_52 = arith.constant 1 : index
    %c0_53 = arith.constant 0 : index
    %c0_54 = arith.constant 0 : index
    %61 = vector.load %arg3[%c1_52, %c0_53, %c0_54] : memref<2x32x256xf32, #tpu.memory_space<vmem>>, vector<1x32x256xf32>
    %62 = vector.shape_cast %61 : vector<1x32x256xf32> to vector<32x256xf32>
    %c1_55 = arith.constant 1 : index
    %c0_56 = arith.constant 0 : index
    %c0_57 = arith.constant 0 : index
    %c0_58 = arith.constant 0 : index
    %63 = vector.load %arg1[%c1_55, %c0_56, %c0_57, %c0_58] : memref<2x4x8x32xf32, #tpu.memory_space<vmem>>, vector<1x1x8x32xf32>
    %64 = vector.shape_cast %63 : vector<1x1x8x32xf32> to vector<8x32xf32>
    %cst_59 = arith.constant dense<0.000000e+00> : vector<8x256xf32>
    %65 = tpu.matmul %64, %62, %cst_59 {dimension_numbers = #tpu.dot_dimension_numbers<[1], [0], [0], [1], [0, 0, 1, 1], [], []>} : vector<8x32xf32>, vector<32x256xf32>, vector<8x256xf32> -> vector<8x256xf32>
    %c1_60 = arith.constant 1 : index
    %c0_61 = arith.constant 0 : index
    %c0_62 = arith.constant 0 : index
    %c0_63 = arith.constant 0 : index
    %66 = vector.load %arg2[%c1_60, %c0_61, %c0_62, %c0_63] : memref<2x4x8x1xf32, #tpu.memory_space<vmem>>, vector<1x1x8x1xf32>
    %67 = vector.shape_cast %66 : vector<1x1x8x1xf32> to vector<8x1xf32>
    %68 = vector.broadcast %67 : vector<8x1xf32> to vector<8x256xf32>
    %69 = arith.addf %65, %68 : vector<8x256xf32>
    %c1_64 = arith.constant 1 : index
    %c0_65 = arith.constant 0 : index
    %c0_66 = arith.constant 0 : index
    %70 = vector.load %arg4[%c1_64, %c0_65, %c0_66] : memref<2x8x1024xf32, #tpu.memory_space<vmem>>, vector<1x8x256xf32>
    %71 = vector.shape_cast %70 : vector<1x8x256xf32> to vector<8x256xf32>
    %72 = vector.shape_cast %69 : vector<8x256xf32> to vector<1x8x256xf32>
    tpu.vector_store %arg4[%c1_64, %c0_65, %c0_66], %72 {strides = array<i32>} : memref<2x8x1024xf32, #tpu.memory_space<vmem>>, vector<1x8x256xf32>,
    %c1_67 = arith.constant 1 : index
    %c1_68 = arith.constant 1 : index
    %c0_69 = arith.constant 0 : index
    %c0_70 = arith.constant 0 : index
    %73 = vector.load %arg1[%c1_67, %c1_68, %c0_69, %c0_70] : memref<2x4x8x32xf32, #tpu.memory_space<vmem>>, vector<1x1x8x32xf32>
    %74 = vector.shape_cast %73 : vector<1x1x8x32xf32> to vector<8x32xf32>
    %cst_71 = arith.constant dense<0.000000e+00> : vector<8x256xf32>
    %75 = tpu.matmul %74, %62, %cst_71 {dimension_numbers = #tpu.dot_dimension_numbers<[1], [0], [0], [1], [0, 0, 1, 1], [], []>} : vector<8x32xf32>, vector<32x256xf32>, vector<8x256xf32> -> vector<8x256xf32>
    %c1_72 = arith.constant 1 : index
    %c1_73 = arith.constant 1 : index
    %c0_74 = arith.constant 0 : index
    %c0_75 = arith.constant 0 : index
    %76 = vector.load %arg2[%c1_72, %c1_73, %c0_74, %c0_75] : memref<2x4x8x1xf32, #tpu.memory_space<vmem>>, vector<1x1x8x1xf32>
    %77 = vector.shape_cast %76 : vector<1x1x8x1xf32> to vector<8x1xf32>
    %78 = vector.broadcast %77 : vector<8x1xf32> to vector<8x256xf32>
    %79 = arith.addf %75, %78 : vector<8x256xf32>
    %c1_76 = arith.constant 1 : index
    %c0_77 = arith.constant 0 : index
    %c256_78 = arith.constant 256 : index
    %80 = vector.load %arg4[%c1_76, %c0_77, %c256_78] : memref<2x8x1024xf32, #tpu.memory_space<vmem>>, vector<1x8x256xf32>
    %81 = vector.shape_cast %80 : vector<1x8x256xf32> to vector<8x256xf32>
    %82 = vector.shape_cast %79 : vector<8x256xf32> to vector<1x8x256xf32>
    tpu.vector_store %arg4[%c1_76, %c0_77, %c256_78], %82 {strides = array<i32>} : memref<2x8x1024xf32, #tpu.memory_space<vmem>>, vector<1x8x256xf32>,
    %c1_79 = arith.constant 1 : index
    %c2_80 = arith.constant 2 : index
    %c0_81 = arith.constant 0 : index
    %c0_82 = arith.constant 0 : index
    %83 = vector.load %arg1[%c1_79, %c2_80, %c0_81, %c0_82] : memref<2x4x8x32xf32, #tpu.memory_space<vmem>>, vector<1x1x8x32xf32>
    %84 = vector.shape_cast %83 : vector<1x1x8x32xf32> to vector<8x32xf32>
    %cst_83 = arith.constant dense<0.000000e+00> : vector<8x256xf32>
    %85 = tpu.matmul %84, %62, %cst_83 {dimension_numbers = #tpu.dot_dimension_numbers<[1], [0], [0], [1], [0, 0, 1, 1], [], []>} : vector<8x32xf32>, vector<32x256xf32>, vector<8x256xf32> -> vector<8x256xf32>
    %c1_84 = arith.constant 1 : index
    %c2_85 = arith.constant 2 : index
    %c0_86 = arith.constant 0 : index
    %c0_87 = arith.constant 0 : index
    %86 = vector.load %arg2[%c1_84, %c2_85, %c0_86, %c0_87] : memref<2x4x8x1xf32, #tpu.memory_space<vmem>>, vector<1x1x8x1xf32>
    %87 = vector.shape_cast %86 : vector<1x1x8x1xf32> to vector<8x1xf32>
    %88 = vector.broadcast %87 : vector<8x1xf32> to vector<8x256xf32>
    %89 = arith.addf %85, %88 : vector<8x256xf32>
    %c1_88 = arith.constant 1 : index
    %c0_89 = arith.constant 0 : index
    %c512_90 = arith.constant 512 : index
    %90 = vector.load %arg4[%c1_88, %c0_89, %c512_90] : memref<2x8x1024xf32, #tpu.memory_space<vmem>>, vector<1x8x256xf32>
    %91 = vector.shape_cast %90 : vector<1x8x256xf32> to vector<8x256xf32>
    %92 = vector.shape_cast %89 : vector<8x256xf32> to vector<1x8x256xf32>
    tpu.vector_store %arg4[%c1_88, %c0_89, %c512_90], %92 {strides = array<i32>} : memref<2x8x1024xf32, #tpu.memory_space<vmem>>, vector<1x8x256xf32>,
    %c1_91 = arith.constant 1 : index
    %c3_92 = arith.constant 3 : index
    %c0_93 = arith.constant 0 : index
    %c0_94 = arith.constant 0 : index
    %93 = vector.load %arg1[%c1_91, %c3_92, %c0_93, %c0_94] : memref<2x4x8x32xf32, #tpu.memory_space<vmem>>, vector<1x1x8x32xf32>
    %94 = vector.shape_cast %93 : vector<1x1x8x32xf32> to vector<8x32xf32>
    %cst_95 = arith.constant dense<0.000000e+00> : vector<8x256xf32>
    %95 = tpu.matmul %94, %62, %cst_95 {dimension_numbers = #tpu.dot_dimension_numbers<[1], [0], [0], [1], [0, 0, 1, 1], [], []>} : vector<8x32xf32>, vector<32x256xf32>, vector<8x256xf32> -> vector<8x256xf32>
    %c1_96 = arith.constant 1 : index
    %c3_97 = arith.constant 3 : index
    %c0_98 = arith.constant 0 : index
    %c0_99 = arith.constant 0 : index
    %96 = vector.load %arg2[%c1_96, %c3_97, %c0_98, %c0_99] : memref<2x4x8x1xf32, #tpu.memory_space<vmem>>, vector<1x1x8x1xf32>
    %97 = vector.shape_cast %96 : vector<1x1x8x1xf32> to vector<8x1xf32>
    %98 = vector.broadcast %97 : vector<8x1xf32> to vector<8x256xf32>
    %99 = arith.addf %95, %98 : vector<8x256xf32>
    %c1_100 = arith.constant 1 : index
    %c0_101 = arith.constant 0 : index
    %c768_102 = arith.constant 768 : index
    %100 = vector.load %arg4[%c1_100, %c0_101, %c768_102] : memref<2x8x1024xf32, #tpu.memory_space<vmem>>, vector<1x8x256xf32>
    %101 = vector.shape_cast %100 : vector<1x8x256xf32> to vector<8x256xf32>
    %102 = vector.shape_cast %99 : vector<8x256xf32> to vector<1x8x256xf32>
    tpu.vector_store %arg4[%c1_100, %c0_101, %c768_102], %102 {strides = array<i32>} : memref<2x8x1024xf32, #tpu.memory_space<vmem>>, vector<1x8x256xf32>,
    %c1_103 = arith.constant 1 : index
    %c0_104 = arith.constant 0 : index
    %c0_105 = arith.constant 0 : index
    %103 = vector.load %arg4[%c1_103, %c0_104, %c0_105] : memref<2x8x1024xf32, #tpu.memory_space<vmem>>, vector<1x8x1024xf32>
    %104 = vector.shape_cast %103 : vector<1x8x1024xf32> to vector<8x1024xf32>
    %cst_106 = arith.constant dense<0xFF800000> : vector<8xf32>
    %105 = vector.multi_reduction <maximumf>, %104, %cst_106 [1] : vector<8x1024xf32> to vector<8xf32>
    %106 = vector.shape_cast %105 : vector<8xf32> to vector<8x1xf32>
    %107 = vector.broadcast %106 : vector<8x1xf32> to vector<8x1024xf32>
    %108 = arith.subf %104, %107 : vector<8x1024xf32>
    %109 = math.exp %108 : vector<8x1024xf32>
    %cst_107 = arith.constant dense<0.000000e+00> : vector<8xf32>
    %110 = vector.multi_reduction <add>, %109, %cst_107 [1] : vector<8x1024xf32> to vector<8xf32>
    %111 = vector.shape_cast %110 : vector<8xf32> to vector<8x1xf32>
    %112 = tpu.reciprocal %111 {approx = true} : vector<8x1xf32> -> vector<8x1xf32>
    %113 = arith.mulf %111, %112 : vector<8x1xf32>
    %cst_108 = arith.constant 2.000000e+00 : f32
    %114 = vector.broadcast %cst_108 : f32 to vector<8x1xf32>
    %115 = arith.subf %114, %113 : vector<8x1xf32>
    %116 = arith.mulf %112, %115 : vector<8x1xf32>
    %117 = vector.broadcast %116 : vector<8x1xf32> to vector<8x1024xf32>
    %118 = arith.mulf %109, %117 : vector<8x1024xf32>
    %c1_109 = arith.constant 1 : index
    %c0_110 = arith.constant 0 : index
    %c0_111 = arith.constant 0 : index
    %119 = vector.load %arg4[%c1_109, %c0_110, %c0_111] : memref<2x8x1024xf32, #tpu.memory_space<vmem>>, vector<1x8x1024xf32>
    %120 = vector.shape_cast %119 : vector<1x8x1024xf32> to vector<8x1024xf32>
    %121 = vector.shape_cast %118 : vector<8x1024xf32> to vector<1x8x1024xf32>
    tpu.vector_store %arg4[%c1_109, %c0_110, %c0_111], %121 {strides = array<i32>} : memref<2x8x1024xf32, #tpu.memory_space<vmem>>, vector<1x8x1024xf32>,
    return
  }
  func.func @transform_0(%arg0: i32) -> (i32, i32, i32, i32) {
    %c0_i32 = arith.constant 0 : i32
    %c0_i32_0 = arith.constant 0 : i32
    %c0_i32_1 = arith.constant 0 : i32
    %c0_i32_2 = arith.constant 0 : i32
    return %arg0, %c0_i32, %c0_i32_0, %c0_i32_1 : i32, i32, i32, i32
  }
  func.func @transform_1(%arg0: i32) -> (i32, i32, i32, i32) {
    %c0_i32 = arith.constant 0 : i32
    %c0_i32_0 = arith.constant 0 : i32
    %c0_i32_1 = arith.constant 0 : i32
    %c0_i32_2 = arith.constant 0 : i32
    return %arg0, %c0_i32, %c0_i32_0, %c0_i32_1 : i32, i32, i32, i32
  }
  func.func @transform_2(%arg0: i32) -> (i32, i32, i32) {
    %c0_i32 = arith.constant 0 : i32
    %c0_i32_0 = arith.constant 0 : i32
    %c0_i32_1 = arith.constant 0 : i32
    return %arg0, %c0_i32, %c0_i32_0 : i32, i32, i32
  }
  func.func @transform_3(%arg0: i32) -> (i32, i32, i32) {
    %c0_i32 = arith.constant 0 : i32
    %c0_i32_0 = arith.constant 0 : i32
    %c0_i32_1 = arith.constant 0 : i32
    return %arg0, %c0_i32, %c0_i32_0 : i32, i32, i32
  }
}

</mosaic_0001>

<bundles_post_ra>
// kernel: tpu_custom_call.1
= control target key start
LH: loop header
LB: loop body
LE: loop exit
PB: predicated region body
PF: predicated region fallthrough
CT: control target
= control target key end

     0   :  { %8 = vsyncpa [#allocation3], 0  ;;  %s904_s0 = inlined_call_operand.vmem [shape: f32[2,4,8,32], index: 0, kind: input, shape index: {}]   ;;  %s905_s1 = inlined_call_operand.vmem [shape: f32[2,4,8,1], index: 1, kind: input, shape index: {}]   ;;  %s906_s2 = inlined_call_operand.hbm [shape: f32[2,32,256], index: 2, kind: input, shape index: {}]   ;;  %s907_s3 = inlined_call_operand.hbm [shape: f32[2,8,1024], index: 3, kind: output, shape index: {}]  }
   0x1   :  { %9 = vsyncpa [#allocation4], 0  ;;  %s18_s14 = sshll.u32 %s906_s2, 4  ;;  %s767_s15 = smov [#allocation2]   ;;  %s19_s14 = int_to_ptr.hbm [resolvable:$true] %s18_s14 }
   0x2   :  { %s20_s16 = sshll.u32 %s767_s15, 4  ;;  %s768_s17 = smov 256   ;;  %s21_s16 = int_to_ptr.vmem [resolvable:$true] %s20_s16 }
   0x3   :  { %s769_s18 = smov 16  }
   0x4   :  { %26 = dma.hbm_to_vmem [thread:$0]  %s19_s14, 2048, %s21_s16, [#allocation3], %s768_s17, %s768_s17, %s769_s18  }
   0x5   :  { %763 = dma.done.wait [#allocation3], 2048  }
   0x6   :  { %764 = vsyncadd [#allocation3], 4294965248  ;;  %v770_v0 = vmov 0   ;;  %v37_v1 = vld [vmem:[#allocation2 + $0x30] sm:$0xff]  ;;  %v38_v2 = vld [vmem:[#allocation2 + $0x38] sm:$0xff]  ;;  %vm46_vm0 = vcmask 261120  }
   0x7   :  { %677 = vset.pattern.permute.xlu1 %v770_v0  ;;  %676 = vset.pattern.permute.xlu0 %v770_v0  ;;  %v35_v3 = vld [vmem:[#allocation2 + $0x20] sm:$0xff]  ;;  %v36_v4 = vld [vmem:[#allocation2 + $0x28] sm:$0xff]  ;;  %v33_v5 = vld [vmem:[#allocation2 + $0x10] sm:$0xff]  ;;  %s626_s24 = sshll.u32 %s907_s3, 4  ;;  %s772_s25 = smov 1024   ;;  %s627_s24 = int_to_ptr.hbm [resolvable:$true] %s626_s24 }
   0x8   :  { %678 = vset.pattern.permute.xlu2 %v770_v0  ;;  %62 = vmatpush.msra.mxu0 %v37_v1  ;;  %v34_v6 = vld [vmem:[#allocation2 + $0x18] sm:$0xff]  ;;  %v31_v7 = vld [vmem:[#allocation2] sm:$0xff]  ;;  %v32_v8 = vld [vmem:[#allocation2 + $0x8] sm:$0xff]  ;;  %s773_s26 = smov 64  }
   0x9   :  { %82 = vmatpush.msra.mxu1 %v38_v2  ;;  %116 = vmatpush.msra.mxu2 %v37_v1  ;;  %v39_v9 = vld [vmem:[%s904_s0] sm:$0xff]  ;;  %v641_v10 = vld [vmem:[%s904_s0 + $0x8] sm:$0xff]  ;;  %v645_v11 = vld [vmem:[%s904_s0 + $0x10] sm:$0xff] }
   0xa   :  { %136 = vmatpush.msra.mxu3 %v38_v2  ;;  %63 = vmatpush.msra.mxu0 %v35_v3  ;;  %v649_v12 = vld [vmem:[%s904_s0 + $0x18] sm:$0xff]  ;;  %v331_v13 = vld [vmem:[#allocation2 + $0x70] sm:$0xff]  ;;  %v40_v16 = vld [vmem:[%s905_s1] sm:$0xff] }
   0xb   :  { %83 = vmatpush.msra.mxu1 %v36_v4  ;;  %117 = vmatpush.msra.mxu2 %v35_v3  ;;  %v332_v14 = vld [vmem:[#allocation2 + $0x78] sm:$0xff]  ;;  %v646_v15 = vld [vmem:[%s905_s1 + $0x10] sm:$0xff]  ;;  %v329_v17 = vld [vmem:[#allocation2 + $0x60] sm:$0xff] }
   0xc   :  { %137 = vmatpush.msra.mxu3 %v36_v4  ;;  %64 = vmatpush.msra.mxu0 %v33_v5  ;;  %v330_v18 = vld [vmem:[#allocation2 + $0x68] sm:$0xff]  ;;  %v327_v19 = vld [vmem:[#allocation2 + $0x50] sm:$0xff]  ;;  %v328_v20 = vld [vmem:[#allocation2 + $0x58] sm:$0xff] }
   0xd   :  { %84 = vmatpush.msra.mxu1 %v34_v6  ;;  %118 = vmatpush.msra.mxu2 %v33_v5  ;;  %v325_v21 = vld [vmem:[#allocation2 + $0x40] sm:$0xff]  ;;  %v326_v22 = vld [vmem:[#allocation2 + $0x48] sm:$0xff]  ;;  %v650_v25 = vld [vmem:[%s905_s1 + $0x18] sm:$0xff] }
   0xe   :  { %138 = vmatpush.msra.mxu3 %v34_v6  ;;  %65 = vmatpush.msra.mxu0 %v31_v7  ;;  %v653_v23 = vld [vmem:[%s904_s0 + $0x20] sm:$0xff]  ;;  %v657_v24 = vld [vmem:[%s904_s0 + $0x28] sm:$0xff]  ;;  %v661_v27 = vld [vmem:[%s904_s0 + $0x30] sm:$0xff] }
   0xf   :  { %85 = vmatpush.msra.mxu1 %v32_v8  ;;  %119 = vmatpush.msra.mxu2 %v31_v7  ;;  %v642_v26 = vld [vmem:[%s905_s1 + $0x8] sm:$0xff]  ;;  %v665_v28 = vld [vmem:[%s904_s0 + $0x38] sm:$0xff]  ;;  %v662_v30 = vld [vmem:[%s905_s1 + $0x30] sm:$0xff] }
  0x10   :  { %139 = vmatpush.msra.mxu3 %v32_v8  ;;  %639 = vmatmul.msk.f32.vlgmr.msra.gmra.mxu0 %vm46_vm0, %v39_v9  ;;  %v666_v29 = vld [vmem:[%s905_s1 + $0x38] sm:$0xff]  ;;  %v654_v31 = vld [vmem:[%s905_s1 + $0x20] sm:$0xff]  ;;  %v658_v32 = vld [vmem:[%s905_s1 + $0x28] sm:$0xff]  ;;  %s771_s1 = smov [#allocation5]  }
  0x11   :  { %640 = vmatmul.msk.f32.vlgmr.msra.gmra.mxu1 %vm46_vm0, %v39_v9  ;;  %643 = vmatmul.msk.f32.vlgmr.msra.gmra.mxu2 %vm46_vm0, %v641_v10  ;;  %s624_s21 = sshll.u32 %s771_s1, 4  ;;  %s625_s21 = int_to_ptr.vmem [resolvable:$true] %s624_s21 }
  0x12   :  { %644 = vmatmul.msk.f32.vlgmr.msra.gmra.mxu3 %vm46_vm0, %v641_v10  ;;  %224 = vmatpush.msrb.mxu2 %v37_v1 }
  0x13   :  { %244 = vmatpush.msrb.mxu3 %v38_v2  ;;  %170 = vmatpush.msrb.mxu0 %v37_v1 }
  0x14   :  { %190 = vmatpush.msrb.mxu1 %v38_v2  ;;  %225 = vmatpush.msrb.mxu2 %v35_v3 }
  0x15   :  { %245 = vmatpush.msrb.mxu3 %v36_v4  ;;  %171 = vmatpush.msrb.mxu0 %v35_v3 }
  0x16   :  { %191 = vmatpush.msrb.mxu1 %v36_v4  ;;  %226 = vmatpush.msrb.mxu2 %v33_v5 }
  0x17   :  { %246 = vmatpush.msrb.mxu3 %v34_v6  ;;  %172 = vmatpush.msrb.mxu0 %v33_v5 }
  0x18   :  { %192 = vmatpush.msrb.mxu1 %v34_v6  ;;  %227 = vmatpush.msrb.mxu2 %v31_v7 }
  0x19   :  { %247 = vmatpush.msrb.mxu3 %v32_v8  ;;  %173 = vmatpush.msrb.mxu0 %v31_v7 }
  0x1a   :  { %193 = vmatpush.msrb.mxu1 %v32_v8  ;;  %647 = vmatmul.msk.f32.vlgmr.msrb.gmra.mxu0 %vm46_vm0, %v645_v11 }
  0x1b   :  { %648 = vmatmul.msk.f32.vlgmr.msrb.gmra.mxu1 %vm46_vm0, %v645_v11  ;;  %651 = vmatmul.msk.f32.vlgmr.msrb.gmra.mxu2 %vm46_vm0, %v649_v12 }
  0x1c   :  { %652 = vmatmul.msk.f32.vlgmr.msrb.gmra.mxu3 %vm46_vm0, %v649_v12  ;;  %412 = vmatpush.msra.mxu2 %v331_v13 }
  0x1d   :  { %432 = vmatpush.msra.mxu3 %v332_v14  ;;  %152 = vperm.xlu1 %677, %v646_v15  }
  0x1e   :  { %43 = vperm.xlu0 %676, %v40_v16   ;;  %357 = vmatpush.msra.mxu0 %v331_v13 }
  0x1f   :  { %377 = vmatpush.msra.mxu1 %v332_v14  ;;  %413 = vmatpush.msra.mxu2 %v329_v17 }
  0x20   :  { %433 = vmatpush.msra.mxu3 %v330_v18  ;;  %358 = vmatpush.msra.mxu0 %v329_v17 }
  0x21   :  { %378 = vmatpush.msra.mxu1 %v330_v18  ;;  %414 = vmatpush.msra.mxu2 %v327_v19 }
  0x22   :  { %434 = vmatpush.msra.mxu3 %v328_v20  ;;  %359 = vmatpush.msra.mxu0 %v327_v19 }
  0x23   :  { %379 = vmatpush.msra.mxu1 %v328_v20  ;;  %415 = vmatpush.msra.mxu2 %v325_v21 }
  0x24   :  { %435 = vmatpush.msra.mxu3 %v326_v22  ;;  %360 = vmatpush.msra.mxu0 %v325_v21 }
  0x25   :  { %380 = vmatpush.msra.mxu1 %v326_v22  ;;  %655 = vmatmul.msk.f32.vlgmr.msra.gmra.mxu0 %vm46_vm0, %v653_v23 }
  0x26   :  { %656 = vmatmul.msk.f32.vlgmr.msra.gmra.mxu1 %vm46_vm0, %v653_v23  ;;  %659 = vmatmul.msk.f32.vlgmr.msra.gmra.mxu2 %vm46_vm0, %v657_v24 }
  0x27   :  { %660 = vmatmul.msk.f32.vlgmr.msra.gmra.mxu3 %vm46_vm0, %v657_v24  ;;  %520 = vmatpush.msrb.mxu2 %v331_v13 }
  0x28   :  { %540 = vmatpush.msrb.mxu3 %v332_v14  ;;  %206 = vperm.xlu1 %677, %v650_v25  }
  0x29   :  { %98 = vperm.xlu0 %676, %v642_v26   ;;  %466 = vmatpush.msrb.mxu0 %v331_v13 }
  0x2a   :  { %486 = vmatpush.msrb.mxu1 %v332_v14  ;;  %521 = vmatpush.msrb.mxu2 %v329_v17 }
  0x2b   :  { %541 = vmatpush.msrb.mxu3 %v330_v18  ;;  %467 = vmatpush.msrb.mxu0 %v329_v17 }
  0x2c   :  { %487 = vmatpush.msrb.mxu1 %v330_v18  ;;  %522 = vmatpush.msrb.mxu2 %v327_v19 }
  0x2d   :  { %542 = vmatpush.msrb.mxu3 %v328_v20  ;;  %468 = vmatpush.msrb.mxu0 %v327_v19 }
  0x2e   :  { %488 = vmatpush.msrb.mxu1 %v328_v20  ;;  %523 = vmatpush.msrb.mxu2 %v325_v21 }
  0x2f   :  { %543 = vmatpush.msrb.mxu3 %v326_v22  ;;  %469 = vmatpush.msrb.mxu0 %v325_v21 }
  0x30   :  { %489 = vmatpush.msrb.mxu1 %v326_v22  ;;  %663 = vmatmul.msk.f32.vlgmr.msrb.gmra.mxu0 %vm46_vm0, %v661_v27 }
  0x31   :  { %664 = vmatmul.msk.f32.vlgmr.msrb.gmra.mxu1 %vm46_vm0, %v661_v27  ;;  %667 = vmatmul.msk.f32.vlgmr.msrb.gmra.mxu2 %vm46_vm0, %v665_v28 }
  0x32   :  { %668 = vmatmul.msk.f32.vlgmr.msrb.gmra.mxu3 %vm46_vm0, %v665_v28  ;;  %502 = vperm.xlu1 %677, %v666_v29  }
  0x33   :  { %448 = vperm.xlu0 %676, %v662_v30   ;;  %339 = vperm.xlu2 %678, %v654_v31  }
  0x3b   :  { %394 = vperm.xlu2 %678, %v658_v32  }
  0x8d   :  { %v67_v33 = vpop.f32.mrf.mxu0  ;;  %v340_v62 = vpop.permute.xlu2 %339 }
  0x8e   :  { %v87_v34 = vpop.f32.mrf.mxu1 }
  0x8f   :  { %v153_v36 = vpop.permute.xlu1 %152 }
  0x90   :  { %v44_v35 = vpop.permute.xlu0 %43 }
  0x91   :  { %v68_v43 = vadd.f32 %v67_v33, %v44_v35  ;;  %v88_v44 = vadd.f32 %v87_v34, %v44_v35 }
  0x94   :  { %v121_v37 = vpop.f32.mrf.mxu2 }
  0x95   :  { %v141_v38 = vpop.f32.mrf.mxu3  ;;  %v395_v4 = vpop.permute.xlu2 %394 }
  0x97   :  { %v175_v39 = vpop.f32.mrf.mxu0 }
  0x98   :  { %v195_v40 = vpop.f32.mrf.mxu1  ;;  %v176_v41 = vadd.f32 %v175_v39, %v153_v36 }
  0x99   :  { %v861_v42 = vadd.f32 %v195_v40, %v153_v36 }
  0x9a   :  { %v207_v46 = vpop.permute.xlu1 %206  ;;  %v262_v49 = vmax.f32 %v68_v43, %v176_v41 }
  0x9b   :  { %v99_v45 = vpop.permute.xlu0 %98  ;;  %v263_v50 = vmax.f32 %v88_v44, %v861_v42 }
  0x9c   :  { %v122_v51 = vadd.f32 %v121_v37, %v99_v45  ;;  %v142_v52 = vadd.f32 %v141_v38, %v99_v45 }
  0x9d   :  { %v266_v57 = vmax.f32 %v262_v49, %v263_v50 }
  0x9e   :  { %v229_v47 = vpop.f32.mrf.mxu2 }
  0x9f   :  { %v249_v48 = vpop.f32.mrf.mxu3  ;;  %v230_v53 = vadd.f32 %v229_v47, %v207_v46 }
  0xa0   :  { %v250_v54 = vadd.f32 %v249_v48, %v207_v46 }
  0xa1   :  { %v264_v55 = vmax.f32 %v122_v51, %v230_v53 }
  0xa2   :  { %v265_v56 = vmax.f32 %v142_v52, %v250_v54  ;;  %v362_v59 = vpop.f32.mrf.mxu0 }
  0xa3   :  { %v382_v60 = vpop.f32.mrf.mxu1  ;;  %v363_v8 = vadd.f32 %v362_v59, %v340_v62 }
  0xa4   :  { %v267_v58 = vmax.f32 %v264_v55, %v265_v56  ;;  %v503_v7 = vpop.permute.xlu1 %502  ;;  %v383_v9 = vadd.f32 %v382_v60, %v340_v62 }
  0xa5   :  { %v449_v3 = vpop.permute.xlu0 %448 }
  0xa6   :  { %v268_v61 = vmax.f32 %v266_v57, %v267_v58 }
  0xa8   :  { %269 = vmax.xlane.f32.xlu2 %v268_v61 }
  0xa9   :  { %v417_v63 = vpop.f32.mrf.mxu2 }
  0xaa   :  { %v437_v0 = vpop.f32.mrf.mxu3  ;;  %v418_v10 = vadd.f32 %v417_v63, %v395_v4 }
  0xab   :  { %v868_v11 = vadd.f32 %v437_v0, %v395_v4 }
  0xad   :  { %v471_v1 = vpop.f32.mrf.mxu0 }
  0xae   :  { %v491_v2 = vpop.f32.mrf.mxu1  ;;  %v864_v5 = vadd.f32 %v471_v1, %v449_v3 }
  0xaf   :  { %v866_v6 = vadd.f32 %v491_v2, %v449_v3 }
  0xb0   :  { %v558_v16 = vmax.f32 %v363_v8, %v864_v5 }
  0xb1   :  { %v559_v17 = vmax.f32 %v383_v9, %v866_v6 }
  0xb3   :  { %v562_v20 = vmax.f32 %v558_v16, %v559_v17 }
  0xb4   :  { %v525_v12 = vpop.f32.mrf.mxu2 }
  0xb5   :  { %v545_v13 = vpop.f32.mrf.mxu3  ;;  %v870_v14 = vadd.f32 %v525_v12, %v503_v7 }
  0xb6   :  { %v872_v15 = vadd.f32 %v545_v13, %v503_v7 }
  0xb7   :  { %v560_v18 = vmax.f32 %v418_v10, %v870_v14 }
  0xb8   :  { %v561_v19 = vmax.f32 %v868_v11, %v872_v15 }
  0xba   :  { %v563_v21 = vmax.f32 %v560_v18, %v561_v19 }
  0xbc   :  { %v564_v22 = vmax.f32 %v562_v20, %v563_v21 }
  0xbe   :  { %565 = vmax.xlane.f32.xlu0 %v564_v22 }
 0x11b   :  { %v270_v23 = vpop.xlane.xlu2 %269 }
 0x11c   :  { %v271_v24 = vsub.f32 %v68_v43, %v270_v23  ;;  %v272_v25 = vsub.f32 %v88_v44, %v270_v23  ;;  %v273_v26 = vsub.f32 %v122_v51, %v270_v23  ;;  %v274_v27 = vsub.f32 %v142_v52, %v270_v23 }
 0x11d   :  { %v275_v30 = vsub.f32 %v176_v41, %v270_v23  ;;  %v276_v32 = vsub.f32 %v861_v42, %v270_v23  ;;  %v277_v35 = vsub.f32 %v230_v53, %v270_v23  ;;  %v278_v38 = vsub.f32 %v250_v54, %v270_v23 }
 0x11e   :  { %v279_v28 = vmul.f32 1.442695, %v271_v24  ;;  %v281_v29 = vmul.f32 1.442695, %v272_v25  ;;  %v283_v31 = vmul.f32 1.442695, %v273_v26 }
 0x11f   :  { %v285_v33 = vmul.f32 1.442695, %v274_v27  ;;  %v287_v34 = vmul.f32 1.442695, %v275_v30  ;;  %v289_v36 = vmul.f32 1.442695, %v276_v32 }
 0x120   :  { %679 = vpow2.f32 %v279_v28  ;;  %v291_v40 = vmul.f32 1.442695, %v277_v35  ;;  %v293_v42 = vmul.f32 1.442695, %v278_v38 }
 0x121   :  { %681 = vpow2.f32 %v281_v29 }
 0x122   :  { %683 = vpow2.f32 %v283_v31 }
 0x123   :  { %685 = vpow2.f32 %v285_v33 }
 0x124   :  { %687 = vpow2.f32 %v287_v34 }
 0x125   :  { %689 = vpow2.f32 %v289_v36 }
 0x126   :  { %v880_v37 = vpop.eup %679  ;;  %691 = vpow2.f32 %v291_v40 }
 0x127   :  { %v882_v39 = vpop.eup %681  ;;  %693 = vpow2.f32 %v293_v42 }
 0x128   :  { %v295_v41 = vadd.f32 %v882_v39, %v880_v37  ;;  %v886_v43 = vpop.eup %683 }
 0x129   :  { %v889_v45 = vpop.eup %685 }
 0x12a   :  { %v296_v44 = vadd.f32 %v886_v43, %v295_v41  ;;  %v688_v47 = vpop.eup %687 }
 0x12b   :  { %v690_v49 = vpop.eup %689 }
 0x12c   :  { %v297_v46 = vadd.f32 %v889_v45, %v296_v44  ;;  %v692_v52 = vpop.eup %691 }
 0x12d   :  { %v694_v58 = vpop.eup %693 }
 0x12e   :  { %v298_v48 = vadd.f32 %v688_v47, %v297_v46 }
 0x130   :  { %v299_v50 = vadd.f32 %v690_v49, %v298_v48 }
 0x131   :  { %v566_v51 = vpop.xlane.xlu0 %565 }
 0x132   :  { %v567_v53 = vsub.f32 %v363_v8, %v566_v51  ;;  %v568_v54 = vsub.f32 %v383_v9, %v566_v51  ;;  %v569_v55 = vsub.f32 %v418_v10, %v566_v51  ;;  %v570_v56 = vsub.f32 %v868_v11, %v566_v51 }
 0x133   :  { %v300_v57 = vadd.f32 %v692_v52, %v299_v50  ;;  %v571_v63 = vsub.f32 %v864_v5, %v566_v51  ;;  %v572_v1 = vsub.f32 %v866_v6, %v566_v51  ;;  %v573_v2 = vsub.f32 %v870_v14, %v566_v51 }
 0x134   :  { %v575_v59 = vmul.f32 1.442695, %v567_v53  ;;  %v577_v60 = vmul.f32 1.442695, %v568_v54  ;;  %v579_v61 = vmul.f32 1.442695, %v569_v55  ;;  %v574_v4 = vsub.f32 %v872_v15, %v566_v51 }
 0x135   :  { %v301_v62 = vadd.f32 %v694_v58, %v300_v57  ;;  %v581_v0 = vmul.f32 1.442695, %v570_v56  ;;  %v583_v3 = vmul.f32 1.442695, %v571_v63  ;;  %v585_v7 = vmul.f32 1.442695, %v572_v1 }
 0x136   :  { %695 = vpow2.f32 %v575_v59  ;;  %v587_v10 = vmul.f32 1.442695, %v573_v2  ;;  %v589_v12 = vmul.f32 1.442695, %v574_v4 }
 0x137   :  { %697 = vpow2.f32 %v577_v60  ;;  %302 = vadd.xlane.f32.xlu1 %v301_v62 }
 0x138   :  { %699 = vpow2.f32 %v579_v61 }
 0x139   :  { %701 = vpow2.f32 %v581_v0 }
 0x13a   :  { %703 = vpow2.f32 %v583_v3 }
 0x13b   :  { %705 = vpow2.f32 %v585_v7 }
 0x13c   :  { %v696_v8 = vpop.eup %695  ;;  %707 = vpow2.f32 %v587_v10 }
 0x13d   :  { %v698_v9 = vpop.eup %697  ;;  %709 = vpow2.f32 %v589_v12 }
 0x13e   :  { %v591_v11 = vadd.f32 %v698_v9, %v696_v8  ;;  %v700_v5 = vpop.eup %699 }
 0x13f   :  { %v702_v16 = vpop.eup %701 }
 0x140   :  { %v592_v13 = vadd.f32 %v700_v5, %v591_v11  ;;  %v704_v17 = vpop.eup %703 }
 0x141   :  { %v706_v18 = vpop.eup %705 }
 0x142   :  { %v593_v6 = vadd.f32 %v702_v16, %v592_v13  ;;  %v708_v15 = vpop.eup %707 }
 0x143   :  { %v710_v21 = vpop.eup %709 }
 0x144   :  { %v594_v14 = vadd.f32 %v704_v17, %v593_v6 }
 0x146   :  { %v595_v19 = vadd.f32 %v706_v18, %v594_v14 }
 0x148   :  { %v596_v20 = vadd.f32 %v708_v15, %v595_v19 }
 0x14a   :  { %v597_v22 = vadd.f32 %v710_v21, %v596_v20 }
 0x14c   :  { %598 = vadd.xlane.f32.xlu2 %v597_v22 }
 0x1aa   :  { %v303_v23 = vpop.xlane.xlu1 %302 }
 0x1ab   :  { %711 = vrcp.f32 %v303_v23 }
 0x1b1   :  { %v712_v24 = vpop.eup %711 }
 0x1b2   :  { %v305_v25 = vmul.f32 %v712_v24, %v303_v23 }
 0x1b4   :  { %v306_v26 = vsub.f32 2.0, %v305_v25 }
 0x1b6   :  { %v307_v27 = vmul.f32 %v712_v24, %v306_v26 }
 0x1b8   :  { %v308_v28 = vmul.f32 %v880_v37, %v307_v27  ;;  %v309_v29 = vmul.f32 %v882_v39, %v307_v27  ;;  %v310_v30 = vmul.f32 %v886_v43, %v307_v27  ;;  %v311_v31 = vmul.f32 %v889_v45, %v307_v27 }
 0x1b9   :  { %v312_v32 = vmul.f32 %v688_v47, %v307_v27  ;;  %v313_v33 = vmul.f32 %v690_v49, %v307_v27  ;;  %v314_v34 = vmul.f32 %v692_v52, %v307_v27  ;;  %v315_v35 = vmul.f32 %v694_v58, %v307_v27 }
 0x1ba   :  { %316 = vst [vmem:[#allocation5] sm:$0xff] %v308_v28 }
 0x1bb   :  { %317 = vst [vmem:[#allocation5 + $0x8] sm:$0xff] %v309_v29 }
 0x1bc   :  { %318 = vst [vmem:[#allocation5 + $0x10] sm:$0xff] %v310_v30 }
 0x1bd   :  { %319 = vst [vmem:[#allocation5 + $0x18] sm:$0xff] %v311_v31 }
 0x1be   :  { %320 = vst [vmem:[#allocation5 + $0x20] sm:$0xff] %v312_v32 }
 0x1bf   :  { %321 = vst [vmem:[#allocation5 + $0x28] sm:$0xff] %v313_v33  ;;  %v599_v36 = vpop.xlane.xlu2 %598 }
 0x1c0   :  { %322 = vst [vmem:[#allocation5 + $0x30] sm:$0xff] %v314_v34  ;;  %713 = vrcp.f32 %v599_v36 }
 0x1c1   :  { %323 = vst [vmem:[#allocation5 + $0x38] sm:$0xff] %v315_v35 }
 0x1c6   :  { %v714_v37 = vpop.eup %713 }
 0x1c7   :  { %v601_v38 = vmul.f32 %v714_v37, %v599_v36 }
 0x1c9   :  { %v602_v39 = vsub.f32 2.0, %v601_v38 }
 0x1cb   :  { %v603_v40 = vmul.f32 %v714_v37, %v602_v39 }
 0x1cd   :  { %v604_v41 = vmul.f32 %v696_v8, %v603_v40  ;;  %v605_v43 = vmul.f32 %v698_v9, %v603_v40  ;;  %v606_v42 = vmul.f32 %v700_v5, %v603_v40  ;;  %v607_v44 = vmul.f32 %v702_v16, %v603_v40 }
 0x1ce   :  { %v608_v45 = vmul.f32 %v704_v17, %v603_v40  ;;  %v609_v46 = vmul.f32 %v706_v18, %v603_v40  ;;  %v610_v47 = vmul.f32 %v708_v15, %v603_v40  ;;  %v611_v48 = vmul.f32 %v710_v21, %v603_v40 }
 0x1cf   :  { %612 = vst [vmem:[#allocation5 + $0x40] sm:$0xff] %v604_v41 }
 0x1d0   :  { %613 = vst [vmem:[#allocation5 + $0x48] sm:$0xff] %v605_v43 }
 0x1d1   :  { %614 = vst [vmem:[#allocation5 + $0x50] sm:$0xff] %v606_v42 }
 0x1d2   :  { %615 = vst [vmem:[#allocation5 + $0x58] sm:$0xff] %v607_v44 }
 0x1d3   :  { %616 = vst [vmem:[#allocation5 + $0x60] sm:$0xff] %v608_v45 }
 0x1d4   :  { %617 = vst [vmem:[#allocation5 + $0x68] sm:$0xff] %v609_v46 }
 0x1d5   :  { %618 = vst [vmem:[#allocation5 + $0x70] sm:$0xff] %v610_v47 }
 0x1d6   :  { %619 = vst [vmem:[#allocation5 + $0x78] sm:$0xff] %v611_v48 }
 0x1d7   :  { %632 = dma.vmem_to_hbm [thread:$0]  %s625_s21, 2048, %s627_s24, [#allocation4], %s772_s25, %s772_s25, %s773_s26  }
 0x1d8   :  { %765 = dma.done.wait [#allocation4], 2048  }
 0x1d9   :  { %766 = vsyncadd [#allocation4], 4294965248 }
 0x1da   :  { %637 = vsyncpa [#allocation3], 1 }
 0x1db   :  { %638 = vsyncpa [#allocation4], 1 }

</bundles_post_ra>
